<compile_context>
chip_gen: v7x
topology: tpu7x:2x2x1
jax: 0.10.0
libtpu: 0.0.40
codegen_flags: <defaults>
</compile_context>

<pallas_src>
import functools
import math

import jax
import jax.numpy as jnp
from jax import lax
from jax.experimental import pallas as pl
from jax.experimental.pallas import tpu as pltpu

EPS = 1e-7       # Consts.Eps
NEG_BIG = -1.0e9


# ----------------------------------------------------------------------------
# Row-tiled matmul + bias (all conv heads are matmuls in rows layout).
# ----------------------------------------------------------------------------
def _matmul_bias_kernel(x_ref, w_ref, b_ref, o_ref):
    o_ref[...] = (
        jnp.dot(x_ref[...], w_ref[...], preferred_element_type=jnp.float32)
        + b_ref[...]
    )


def matmul_bias(x, w, b, *, tm=1024):
    rows, kdim = x.shape
    _, ncol = w.shape
    tm = rows if rows <= tm else tm          # small inputs: one full-extent block
    return pl.pallas_call(
        _matmul_bias_kernel,
        out_shape=jax.ShapeDtypeStruct((rows, ncol), jnp.float32),
        grid=(pl.cdiv(rows, tm),),
        in_specs=[
            pl.BlockSpec((tm, kdim), lambda i: (i, 0)),
            pl.BlockSpec((kdim, ncol), lambda i: (0, 0)),
            pl.BlockSpec((1, ncol), lambda i: (0, 0)),
        ],
        out_specs=pl.BlockSpec((tm, ncol), lambda i: (i, 0)),
        compiler_params=pltpu.CompilerParams(
            dimension_semantics=("parallel",),
            vmem_limit_bytes=32 * 1024 * 1024,
        ),
    )(x, w, b.reshape(1, ncol))


# ----------------------------------------------------------------------------
# In-kernel helper: (p, c) @ (c, T) -> (p, T).  VPU broadcast-FMA when the
# contraction is tiny (d=4 / k=8 would waste the MXU), MXU dot otherwise.
# ----------------------------------------------------------------------------
def _small_contract(a, b, c_len):
    if c_len <= 16:
        acc = a[:, 0:1] * b[0:1, :]
        for i in range(1, c_len):
            acc = acc + a[:, i:i + 1] * b[i:i + 1, :]
        return acc
    return lax.dot_general(a, b, (((1,), (0,)), ((), ())),
                           preferred_element_type=jnp.float32)


# ----------------------------------------------------------------------------
# Fused _multiCodebookQuantization forward + dequant residual.
# Lane axis = hw tile, sublane axis = k (or d). One (n, m, hw-tile) block/step.
# ----------------------------------------------------------------------------
def _quantize_kernel(temp_ref, xq_ref, zl_ref, cb_ref, cbt_ref, drop_ref, gum_ref,
                     logit_ref, code_ref, scode_ref, resid_ref, *, scale, k, d):
    mi = pl.program_id(1)

    x = xq_ref[0, 0]        # (d, T)  quantizationHead(z)
    zl = zl_ref[0, 0]       # (d, T)  latentHead(z)
    c = cb_ref[0]           # (k, d)  codebook
    ct = cbt_ref[0]         # (d, k)  codebook^T
    drop = drop_ref[0, 0]   # (k, T)  _randomDrop addend (0 or -1e9)
    gumbel = gum_ref[0, 0]  # (k, T)  gumbel(0, 1) noise
    t = x.shape[1]

    # ---- distance = |x|^2 + |c|^2 - 2 c.x  ->  logit (k, T) ----
    inter = _small_contract(c, x, d)                             # (k, T)
    x2 = jnp.sum(x * x, axis=0, keepdims=True)                   # (1, T)
    c2 = jnp.sum(c * c, axis=1, keepdims=True)                   # (k, 1)
    dist = x2 + c2 - 2.0 * inter

    temp = jnp.maximum(temp_ref[mi], EPS)                        # LowerBound(Eps)(T)
    logit = (-dist / scale) * temp + drop
    logit_ref[0, 0] = logit

    # ---- argmax over k (sublane reduce): code + hard gumbel sample ----
    k_iota_f = lax.broadcasted_iota(jnp.int32, (k, t), 0).astype(jnp.float32)

    max_l = jnp.max(logit, axis=0, keepdims=True)
    code_f = jnp.min(jnp.where(logit == max_l, k_iota_f, float(k)),
                     axis=0, keepdims=True)                      # first maximal index
    code_ref[0, 0] = code_f.astype(jnp.int32)

    pert = logit + gumbel                                        # gumbelSoftmax(tau=1)
    max_p = jnp.max(pert, axis=0, keepdims=True)
    scode_f = jnp.min(jnp.where(pert == max_p, k_iota_f, float(k)),
                      axis=0, keepdims=True)
    scode_ref[0, 0] = scode_f.astype(jnp.int32)

    # ---- fused dequantize + residual: zl - sample @ codebook  (d, T) ----
    s = (k_iota_f == scode_f).astype(jnp.float32)                # hard one-hot (k, T)
    resid_ref[0, 0] = zl - _small_contract(ct, s, k)


def quantize(xq_t, zl_t, codebook, codebook_t, temperature, drop, gumbel):
    n, m, d, hw = xq_t.shape
    _, k, _ = codebook.shape
    scale = math.sqrt(k)

    # hw tile: lane-dense multiple of 128 when possible, otherwise full extent.
    t_hw = min(hw, 1024) if hw % 128 == 0 else hw
    n_t = pl.cdiv(hw, t_hw)

    def im_x(ni, mi, ti):
        return (ni, mi, 0, ti)

    def im_cb(ni, mi, ti):
        return (mi, 0, 0)

    kernel = functools.partial(_quantize_kernel, scale=scale, k=k, d=d)
    return pl.pallas_call(
        kernel,
        out_shape=(
            jax.ShapeDtypeStruct((n, m, k, hw), jnp.float32),   # logit (k-major)
            jax.ShapeDtypeStruct((n, m, 1, hw), jnp.int32),     # code  = argmax(logit)
            jax.ShapeDtypeStruct((n, m, 1, hw), jnp.int32),     # scode = argmax(logit+g)
            jax.ShapeDtypeStruct((n, m, d, hw), jnp.float32),   # residual
        ),
        grid=(n, m, n_t),
        in_specs=[
            pl.BlockSpec(memory_space=pltpu.MemorySpace.SMEM),  # temperature (m,)
            pl.BlockSpec((1, 1, d, t_hw), im_x),                # xq  (n, m, d, hw)
            pl.BlockSpec((1, 1, d, t_hw), im_x),                # zl  (n, m, d, hw)
            pl.BlockSpec((1, k, d), im_cb),                     # codebook
            pl.BlockSpec((1, d, k), im_cb),                     # codebook^T
            pl.BlockSpec((1, 1, k, t_hw), im_x),                # drop addend
            pl.BlockSpec((1, 1, k, t_hw), im_x),                # gumbel noise
        ],
        out_specs=(
            pl.BlockSpec((1, 1, k, t_hw), im_x),
            pl.BlockSpec((1, 1, 1, t_hw), im_x),
            pl.BlockSpec((1, 1, 1, t_hw), im_x),
            pl.BlockSpec((1, 1, d, t_hw), im_x),
        ),
        compiler_params=pltpu.CompilerParams(
            dimension_semantics=("parallel", "parallel", "parallel"),
            vmem_limit_bytes=32 * 1024 * 1024,
        ),
    )(temperature, xq_t, zl_t, codebook, codebook_t, drop, gumbel)


# ----------------------------------------------------------------------------
# _quantizerEncoder.forward
# ----------------------------------------------------------------------------
def quantizer_encoder_forward(params, x, key):
    n, cin, h, w = x.shape
    m, k, d = params["codebook"].shape
    h2, w2 = h // 2, w // 2
    hw = h2 * w2

    # latentStageEncoder: 2x2 stride-2 conv == space-to-depth + matmul (rows layout)
    xp = (
        x.reshape(n, cin, h2, 2, w2, 2)
        .transpose(0, 2, 4, 3, 5, 1)                 # (n, h2, w2, kh, kw, cin)
        .reshape(n * hw, 4 * cin)
    )
    z_rows = matmul_bias(xp, params["w_enc"], params["b_enc"])      # (n*hw, cz)

    # quantizationHead + latentHead fused into one matmul over z (shared LHS)
    w_heads = jnp.concatenate([params["w_qhead"], params["w_lhead"]], axis=1)
    b_heads = jnp.concatenate([params["b_qhead"], params["b_lhead"]], axis=0)
    heads = matmul_bias(z_rows, w_heads, b_heads)                   # (n*hw, 2*m*d)
    heads = heads.reshape(n, hw, 2, m, d)
    xq_t = heads[:, :, 0].transpose(0, 2, 3, 1)                     # (n, m, d, hw)
    zl_t = heads[:, :, 1].transpose(0, 2, 3, 1)                     # (n, m, d, hw)

    # _randomDrop mask + gumbel noise, generated with jax.random in (n, m, k, hw)
    # layout (the in-kernel HW PRNG has no interpret/CPU lowering).
    freqEMA = params["freqEMA"]                                     # (m, k)
    bits = math.log2(k)
    code_usage = jnp.clip(jnp.mean((freqEMA > EPS).astype(jnp.float32)), 0.0, 1.0)
    exponent = -(bits - 1.0) * code_usage ** 2 + bits
    k_drop, k_gum = jax.random.split(key)
    u = jax.random.uniform(k_drop, (n, m, k, hw), jnp.float32)
    drop = jnp.where(u ** exponent < freqEMA[None, :, :, None], NEG_BIG, 0.0)
    gumbel = jax.random.gumbel(k_gum, (n, m, k, hw), jnp.float32)

    cb = params["codebook"].astype(jnp.float32)                     # (m, k, d)
    cbt = jnp.transpose(cb, (0, 2, 1))                              # (m, d, k)

    logit_t, code4, scode4, resid_t = quantize(
        xq_t, zl_t, cb, cbt, params["temperature"], drop, gumbel)

    # back to PyTorch output layouts
    code = code4[:, :, 0, :].reshape(n, m, h2, w2)                  # int32 (torch: int64)
    scode = scode4[:, :, 0, :].reshape(n, m, h2, w2)
    q = jax.nn.one_hot(scode, k, dtype=jnp.float32)                 # gumbelSoftmax hard
    onehot = jax.nn.one_hot(code, k, dtype=jnp.float32)             # scatter(argmax(logit))
    logit = jnp.transpose(logit_t, (0, 1, 3, 2)).reshape(n, m, h2, w2, k)
    resid = resid_t.reshape(n, m * d, h2, w2)
    # TODO(synk): gumbel-softmax straight-through (soft) gradient path is not
    # represented; forward value (hard one-hot) only.
    return q, resid, code, onehot, logit


if __name__ == "__main__":
    key = jax.random.PRNGKey(0)
    N, CIN, H, W = 2, 4, 16, 16
    M, K, D = 2, 8, 4          # codebook: (M groups, K entries, D dim)
    CZ = 8                     # latent channels after the stage encoder

    keys = jax.random.split(key, 8)
    x = jax.random.normal(keys[0], (N, CIN, H, W), jnp.float32)
    params = dict(
        w_enc=0.1 * jax.random.normal(keys[1], (4 * CIN, CZ), jnp.float32),
        b_enc=jnp.zeros((CZ,), jnp.float32),
        w_qhead=0.1 * jax.random.normal(keys[2], (CZ, M * D), jnp.float32),
        b_qhead=jnp.zeros((M * D,), jnp.float32),
        w_lhead=0.1 * jax.random.normal(keys[3], (CZ, M * D), jnp.float32),
        b_lhead=jnp.zeros((M * D,), jnp.float32),
        codebook=jax.random.normal(keys[4], (M, K, D), jnp.float32),
        temperature=jnp.ones((M,), jnp.float32),       # nn.Parameter ones((m,1,1,1))
        freqEMA=jnp.zeros((M, K), jnp.float32),        # initial EMA state
    )

    q, resid, code, onehot, logit = quantizer_encoder_forward(params, x, keys[5])
    jax.block_until_ready((q, resid, code, onehot, logit))

    H2, W2 = H // 2, W // 2
    assert q.shape == (N, M, H2, W2, K)
    assert resid.shape == (N, M * D, H2, W2)
    assert code.shape == (N, M, H2, W2)
    assert onehot.shape == (N, M, H2, W2, K)
    assert logit.shape == (N, M, H2, W2, K)
    # oneHot rows must sum to 1, sample rows must sum to 1
    assert bool(jnp.allclose(jnp.sum(onehot, axis=-1), 1.0))
    assert bool(jnp.allclose(jnp.sum(q, axis=-1), 1.0))
    # code must be consistent with argmax of the returned logit
    assert bool(jnp.all(jnp.argmax(logit, axis=-1).astype(jnp.int32) == code))

    print("KERNEL_OK")
</pallas_src>

<mosaic_0001>
module attributes {stable_mosaic.version = 11 : i64} {
  func.func @_matmul_bias_kernel(%arg0: i32, %arg1: memref<128x16xf32, #tpu.memory_space<vmem>>, %arg2: memref<16x8xf32, #tpu.memory_space<vmem>>, %arg3: memref<1x8xf32, #tpu.memory_space<vmem>>, %arg4: memref<128x8xf32, #tpu.memory_space<vmem>>) attributes {dimension_semantics = [#tpu.dimension_semantics<parallel>], iteration_bounds = array<i64: 1>, scalar_prefetch = 0 : i64, scratch_operands = 0 : i64, tpu.core_type = #tpu.core_type<tc>, window_params = [{transform_indices = @transform_0, window_bounds = array<i64: 128, 16>}, {pipeline_mode = #tpu.pipeline_mode<synchronous>, transform_indices = @transform_1, window_bounds = array<i64: 16, 8>}, {pipeline_mode = #tpu.pipeline_mode<synchronous>, transform_indices = @transform_2, window_bounds = array<i64: 1, 8>}, {transform_indices = @transform_3, window_bounds = array<i64: 128, 8>}]} {
    %c0 = arith.constant 0 : index
    %c0_0 = arith.constant 0 : index
    %0 = vector.load %arg1[%c0, %c0_0] : memref<128x16xf32, #tpu.memory_space<vmem>>, vector<128x16xf32>
    %c0_1 = arith.constant 0 : index
    %c0_2 = arith.constant 0 : index
    %1 = vector.load %arg2[%c0_1, %c0_2] : memref<16x8xf32, #tpu.memory_space<vmem>>, vector<16x8xf32>
    %cst = arith.constant dense<0.000000e+00> : vector<128x8xf32>
    %2 = tpu.matmul %0, %1, %cst {dimension_numbers = #tpu.dot_dimension_numbers<[1], [0], [0], [1], [0, 0, 1, 1], [], []>} : vector<128x16xf32>, vector<16x8xf32>, vector<128x8xf32> -> vector<128x8xf32>
    %c0_3 = arith.constant 0 : index
    %c0_4 = arith.constant 0 : index
    %3 = vector.load %arg3[%c0_3, %c0_4] : memref<1x8xf32, #tpu.memory_space<vmem>>, vector<1x8xf32>
    %4 = vector.broadcast %3 : vector<1x8xf32> to vector<128x8xf32>
    %5 = arith.addf %2, %4 : vector<128x8xf32>
    %c0_5 = arith.constant 0 : index
    %c0_6 = arith.constant 0 : index
    %6 = vector.load %arg4[%c0_5, %c0_6] : memref<128x8xf32, #tpu.memory_space<vmem>>, vector<128x8xf32>
    tpu.vector_store %arg4[%c0_5, %c0_6], %5 {strides = array<i32>} : memref<128x8xf32, #tpu.memory_space<vmem>>, vector<128x8xf32>,
    return
  }
  func.func @transform_0(%arg0: i32) -> (i32, i32) {
    %c0_i32 = arith.constant 0 : i32
    %c0_i32_0 = arith.constant 0 : i32
    return %arg0, %c0_i32 : i32, i32
  }
  func.func @transform_1(%arg0: i32) -> (i32, i32) {
    %c0_i32 = arith.constant 0 : i32
    %c0_i32_0 = arith.constant 0 : i32
    %c0_i32_1 = arith.constant 0 : i32
    return %c0_i32, %c0_i32_0 : i32, i32
  }
  func.func @transform_2(%arg0: i32) -> (i32, i32) {
    %c0_i32 = arith.constant 0 : i32
    %c0_i32_0 = arith.constant 0 : i32
    %c0_i32_1 = arith.constant 0 : i32
    return %c0_i32, %c0_i32_0 : i32, i32
  }
  func.func @transform_3(%arg0: i32) -> (i32, i32) {
    %c0_i32 = arith.constant 0 : i32
    %c0_i32_0 = arith.constant 0 : i32
    return %arg0, %c0_i32 : i32, i32
  }
}

</mosaic_0001>

<bundles_post_ra>
// kernel: tpu_custom_call.1
= control target key start
LH: loop header
LB: loop body
LE: loop exit
PB: predicated region body
PF: predicated region fallthrough
CT: control target
= control target key end

     0   :  { %vm39_vm0 = vcmask 130048   ;;  %vm233_vm1 = vcmask 64512   ;;  %s480_s1 = inlined_call_operand.vmem [shape: f32[16,8], index: 1, kind: input, shape index: {}]   ;;  %s481_s0 = inlined_call_operand.vmem [shape: f32[128,16], index: 0, kind: input, shape index: {}]   ;;  %s482_s2 = inlined_call_operand.vmem [shape: f32[1,8], index: 2, kind: input, shape index: {}]   ;;  %s483_s3 = inlined_call_operand.vmem [shape: f32[128,8], index: 3, kind: output, shape index: {}]  }
   0x1   :  { %v30_v0 = vld [vmem:[%s480_s1] sm:$0xff]  ;;  %v31_v1 = vld [vmem:[%s480_s1 + $0x8] sm:$0xff]  ;;  %v16_v7 = vld [vmem:[%s481_s0 + $0x10] sm:$0xff] }
   0x2   :  { %v14_v2 = vld [vmem:[%s481_s0] sm:$0xff]  ;;  %v317_v3 = vpack.c.bf16 %v31_v1, %v30_v0  ;;  %v15_v5 = vld [vmem:[%s481_s0 + $0x8] sm:$0xff]  ;;  %v24_v8 = vld [vmem:[%s481_s0 + $0x50] sm:$0xff] }
   0x3   :  { %293 = vmatprep.mubr.msk.f32.mxu0 %vm39_vm0, %v14_v2  ;;  %v22_v4 = vld [vmem:[%s481_s0 + $0x40] sm:$0xff]  ;;  %v23_v6 = vld [vmem:[%s481_s0 + $0x48] sm:$0xff]  ;;  %v17_v9 = vld [vmem:[%s481_s0 + $0x18] sm:$0xff] }
   0x4   :  { %305 = vmatprep.mubr.msk.f32.mxu1 %vm39_vm0, %v22_v4  ;;  %318 = vmatprep.subr.bf16.mxu0 %v317_v3  ;;  %v25_v10 = vld [vmem:[%s481_s0 + $0x58] sm:$0xff]  ;;  %v18_v11 = vld [vmem:[%s481_s0 + $0x20] sm:$0xff]  ;;  %v19_v13 = vld [vmem:[%s481_s0 + $0x28] sm:$0xff] }
   0x5   :  { %321 = vmatprep.subr.bf16.mxu1 %v317_v3  ;;  %320 = vmatpush3.bf16.msra.mxu0 %v317_v3  ;;  %v26_v12 = vld [vmem:[%s481_s0 + $0x60] sm:$0xff]  ;;  %v27_v14 = vld [vmem:[%s481_s0 + $0x68] sm:$0xff]  ;;  %v20_v15 = vld [vmem:[%s481_s0 + $0x30] sm:$0xff] }
   0x6   :  { %322 = vmatpush3.bf16.msra.mxu1 %v317_v3  ;;  %v28_v16 = vld [vmem:[%s481_s0 + $0x70] sm:$0xff]  ;;  %v21_v17 = vld [vmem:[%s481_s0 + $0x38] sm:$0xff]  ;;  %v254_v19 = vld [vmem:[%s482_s2] ss:$0 sm:$0xff] }
   0x7   :  { %v29_v18 = vld [vmem:[%s481_s0 + $0x78] sm:$0xff] }
   0x8   :  { %294 = vmatmul.mubr.msk.f32.vlgmr.msra.gmra.mrb[0].mxu0 %vm39_vm0, %v15_v5 }
   0x9   :  { %306 = vmatmul.mubr.msk.f32.vlgmr.msra.gmra.mrb[0].mxu1 %vm39_vm0, %v23_v6  ;;  %296 = vmatprep.mubr.msk.f32.mxu0 %vm39_vm0, %v16_v7 }
   0xa   :  { %308 = vmatprep.mubr.msk.f32.mxu1 %vm39_vm0, %v24_v8 }
   0xc   :  { %297 = vmatmul.mubr.msk.f32.gmra.mrb[2].mxu0 %vm39_vm0, %v17_v9 }
   0xd   :  { %309 = vmatmul.mubr.msk.f32.gmra.mrb[2].mxu1 %vm39_vm0, %v25_v10  ;;  %299 = vmatprep.mubr.msk.f32.mxu0 %vm39_vm0, %v18_v11 }
   0xe   :  { %311 = vmatprep.mubr.msk.f32.mxu1 %vm39_vm0, %v26_v12 }
  0x10   :  { %300 = vmatmul.mubr.msk.f32.gmra.mrb[4].mxu0 %vm39_vm0, %v19_v13 }
  0x11   :  { %312 = vmatmul.mubr.msk.f32.gmra.mrb[4].mxu1 %vm39_vm0, %v27_v14  ;;  %302 = vmatprep.mubr.msk.f32.mxu0 %vm39_vm0, %v20_v15 }
  0x12   :  { %314 = vmatprep.mubr.msk.f32.mxu1 %vm39_vm0, %v28_v16 }
  0x14   :  { %303 = vmatmul.mubr.msk.f32.gmra.mrb[6].mxu0 %vm39_vm0, %v21_v17 }
  0x15   :  { %315 = vmatmul.mubr.msk.f32.gmra.mrb[6].mxu1 %vm39_vm0, %v29_v18 }
  0xdb   :  { %v295_v20 = vpop.f32.mrb[0].mxu0 }
  0xdc   :  { %v307_v21 = vpop.f32.mrb[0].mxu1  ;;  %v160_v22 = vadd.f32 %v295_v20, %v254_v19  ;;  %v154_v24 = vpop.f32.mrb[1].mxu0 }
  0xdd   :  { %v200_v23 = vadd.f32 %v307_v21, %v254_v19  ;;  %v194_v25 = vpop.f32.mrb[1].mxu1  ;;  %v155_v26 = vadd.f32 %v254_v19, %v154_v24 }
  0xde   :  { %v195_v27 = vadd.f32 %v254_v19, %v194_v25  ;;  %235 = vst.msk [vmem:[%s483_s3 + $0x8] sm:$0xff] %vm233_vm1, %v160_v22 }
  0xdf   :  { %243 = vst.msk [vmem:[%s483_s3 + $0x48] sm:$0xff] %vm233_vm1, %v200_v23  ;;  %234 = vst.msk [vmem:[%s483_s3] sm:$0xff] %vm233_vm1, %v155_v26  ;;  %v298_v28 = vpop.f32.mrb[2].mxu0 }
  0xe0   :  { %242 = vst.msk [vmem:[%s483_s3 + $0x40] sm:$0xff] %vm233_vm1, %v195_v27  ;;  %v310_v29 = vpop.f32.mrb[2].mxu1  ;;  %v170_v30 = vadd.f32 %v298_v28, %v254_v19  ;;  %v164_v32 = vpop.f32.mrb[3].mxu0 }
  0xe1   :  { %v210_v31 = vadd.f32 %v310_v29, %v254_v19  ;;  %v204_v33 = vpop.f32.mrb[3].mxu1  ;;  %v165_v34 = vadd.f32 %v254_v19, %v164_v32 }
  0xe2   :  { %v205_v35 = vadd.f32 %v254_v19, %v204_v33  ;;  %237 = vst.msk [vmem:[%s483_s3 + $0x18] sm:$0xff] %vm233_vm1, %v170_v30 }
  0xe3   :  { %245 = vst.msk [vmem:[%s483_s3 + $0x58] sm:$0xff] %vm233_vm1, %v210_v31  ;;  %236 = vst.msk [vmem:[%s483_s3 + $0x10] sm:$0xff] %vm233_vm1, %v165_v34  ;;  %v301_v36 = vpop.f32.mrb[4].mxu0 }
  0xe4   :  { %244 = vst.msk [vmem:[%s483_s3 + $0x50] sm:$0xff] %vm233_vm1, %v205_v35  ;;  %v313_v37 = vpop.f32.mrb[4].mxu1  ;;  %v180_v38 = vadd.f32 %v301_v36, %v254_v19  ;;  %v174_v40 = vpop.f32.mrb[5].mxu0 }
  0xe5   :  { %v220_v39 = vadd.f32 %v313_v37, %v254_v19  ;;  %v214_v41 = vpop.f32.mrb[5].mxu1  ;;  %v175_v42 = vadd.f32 %v254_v19, %v174_v40 }
  0xe6   :  { %v215_v43 = vadd.f32 %v254_v19, %v214_v41  ;;  %239 = vst.msk [vmem:[%s483_s3 + $0x28] sm:$0xff] %vm233_vm1, %v180_v38 }
  0xe7   :  { %247 = vst.msk [vmem:[%s483_s3 + $0x68] sm:$0xff] %vm233_vm1, %v220_v39  ;;  %238 = vst.msk [vmem:[%s483_s3 + $0x20] sm:$0xff] %vm233_vm1, %v175_v42  ;;  %v304_v44 = vpop.f32.mrb[6].mxu0 }
  0xe8   :  { %246 = vst.msk [vmem:[%s483_s3 + $0x60] sm:$0xff] %vm233_vm1, %v215_v43  ;;  %v316_v45 = vpop.f32.mrb[6].mxu1  ;;  %v190_v46 = vadd.f32 %v304_v44, %v254_v19  ;;  %v184_v48 = vpop.f32.mrb[7].mxu0 }
  0xe9   :  { %v230_v47 = vadd.f32 %v316_v45, %v254_v19  ;;  %v224_v49 = vpop.f32.mrb[7].mxu1  ;;  %v185_v50 = vadd.f32 %v254_v19, %v184_v48 }
  0xea   :  { %v225_v51 = vadd.f32 %v254_v19, %v224_v49  ;;  %241 = vst.msk [vmem:[%s483_s3 + $0x38] sm:$0xff] %vm233_vm1, %v190_v46 }
  0xeb   :  { %249 = vst.msk [vmem:[%s483_s3 + $0x78] sm:$0xff] %vm233_vm1, %v230_v47  ;;  %240 = vst.msk [vmem:[%s483_s3 + $0x30] sm:$0xff] %vm233_vm1, %v185_v50 }
  0xec   :  { %248 = vst.msk [vmem:[%s483_s3 + $0x70] sm:$0xff] %vm233_vm1, %v225_v51 }

</bundles_post_ra>
